<compile_context>
chip_gen: v5e
topology: v5e:2x2
jax: 0.10.0
libtpu: 0.0.40
codegen_flags: <defaults>
</compile_context>

<pallas_src>
import jax
import jax.numpy as jnp
from jax.experimental import pallas as pl
from jax.experimental.pallas import tpu as pltpu


_SMALL_STATE_DIM = 8  # below this, layer 1 is done on the VPU instead of the MXU


def _policy_mean_kernel(x_ref, w1_ref, b1_ref, w2_ref, b2_ref, w3_ref, b3_ref,
                        mean_ref):
    """One batch tile: mean = L3(relu(L2(relu(L1(x)))))."""
    x = x_ref[...]                         # (TB, S) f32
    S = x.shape[1]

    # ---- layer 1 ----
    if S <= _SMALL_STATE_DIM:
        # state_dim tiny: two broadcast FMAs on the VPU; w1 stays f32 (it is
        # only S*H*4 bytes) and no MXU push/pop sits at the head of the chain.
        w1 = w1_ref[...]                   # (S, H) f32
        h1 = b1_ref[...]                   # (1, H) broadcasts over TB rows
        for s in range(S):                 # static, tiny trip count
            h1 = h1 + x[:, s:s + 1] * w1[s:s + 1, :]
    else:
        h1 = jnp.dot(x.astype(jnp.bfloat16), w1_ref[...],
                     preferred_element_type=jnp.float32) + b1_ref[...]
    h1 = jnp.maximum(h1, 0.0)              # (TB, H) f32 (ReLU in f32: v5e-safe)

    # ---- layer 2: bf16 MXU inputs, f32 accumulate / epilogue ----
    h2 = jnp.dot(h1.astype(jnp.bfloat16), w2_ref[...],
                 preferred_element_type=jnp.float32)
    h2 = jnp.maximum(h2 + b2_ref[...], 0.0)

    # ---- mean head ----
    mean = jnp.dot(h2.astype(jnp.bfloat16), w3_ref[...],
                   preferred_element_type=jnp.float32)
    mean_ref[...] = mean + b3_ref[...]


def policy_network_forward(state, params, *, batch_tile=256):
    """state: (B, state_dim) f32. Returns (mean (B, action_dim), std (action_dim,))."""
    w1, b1, w2, b2, w3, b3, log_std = params
    B, S = state.shape
    H = w1.shape[1]
    A = w3.shape[1]

    # std is state-independent: compute once outside the kernel.
    std = jnp.exp(log_std) + 1e-6          # (A,)

    # bf16 weights for MXU inputs (w1 only when it actually hits the MXU).
    small_state = S <= _SMALL_STATE_DIM
    w1_k = w1 if small_state else w1.astype(jnp.bfloat16)
    w2_k = w2.astype(jnp.bfloat16)
    w3_k = w3.astype(jnp.bfloat16)

    # Tile the batch: pad rows to a sublane-friendly multiple of the tile.
    tb = min(batch_tile, max(8, B))
    tb = max(8, (tb // 8) * 8)
    Bp = pl.cdiv(B, tb) * tb
    x = state if Bp == B else jnp.pad(state, ((0, Bp - B), (0, 0)))
    grid = (Bp // tb,)

    def const_spec(shape):
        # Weights/biases: same block every grid step -> stay VMEM-resident.
        return pl.BlockSpec(shape, lambda i: (0, 0))

    mean = pl.pallas_call(
        _policy_mean_kernel,
        out_shape=jax.ShapeDtypeStruct((Bp, A), jnp.float32),
        grid=grid,
        in_specs=[
            pl.BlockSpec((tb, S), lambda i: (i, 0)),   # state tile (batch-blocked)
            const_spec((S, H)), const_spec((1, H)),    # w1, b1
            const_spec((H, H)), const_spec((1, H)),    # w2, b2
            const_spec((H, A)), const_spec((1, A)),    # w3, b3
        ],
        out_specs=pl.BlockSpec((tb, A), lambda i: (i, 0)),
        compiler_params=pltpu.CompilerParams(
            dimension_semantics=("parallel",)),        # shard batch tiles across TCs
    )(x, w1_k, b1, w2_k, b2, w3_k, b3)

    if Bp != B:
        mean = mean[:B]
    return mean, std


def init_params(key, state_dim=2, action_dim=2, hidden_dim=256):
    """Deterministic synthetic init (PyTorch-Linear-like uniform fan-in bounds)."""
    ks = jax.random.split(key, 6)

    def linear(kw, kb, fan_in, fan_out):
        bound = 1.0 / jnp.sqrt(fan_in)
        # stored as (in, out) so the kernel does x @ W directly
        w = jax.random.uniform(kw, (fan_in, fan_out), jnp.float32, -bound, bound)
        b = jax.random.uniform(kb, (1, fan_out), jnp.float32, -bound, bound)
        return w, b

    w1, b1 = linear(ks[0], ks[1], state_dim, hidden_dim)
    w2, b2 = linear(ks[2], ks[3], hidden_dim, hidden_dim)
    w3, b3 = linear(ks[4], ks[5], hidden_dim, action_dim)
    log_std = jnp.zeros((action_dim,), jnp.float32)  # nn.Parameter(torch.zeros(action_dim))
    return (w1, b1, w2, b2, w3, b3, log_std)


def reference_forward(state, params):
    w1, b1, w2, b2, w3, b3, log_std = params
    h = jnp.maximum(state @ w1 + b1, 0.0)
    h = jnp.maximum(h @ w2 + b2, 0.0)
    mean = h @ w3 + b3
    std = jnp.exp(log_std) + 1e-6
    return mean, std


if __name__ == "__main__":
    key = jax.random.PRNGKey(0)
    k_params, k_state = jax.random.split(key)

    state_dim, action_dim, hidden_dim, batch = 2, 2, 256, 8
    params = init_params(k_params, state_dim, action_dim, hidden_dim)
    state = jax.random.normal(k_state, (batch, state_dim), jnp.float32)

    mean, std = policy_network_forward(state, params)
    jax.block_until_ready((mean, std))

    ref_mean, ref_std = reference_forward(state, params)
    assert mean.shape == (batch, action_dim)
    assert std.shape == (action_dim,)
    # Tolerance loosened vs. the pure-f32 version: w2/w3 feed the MXU in bf16
    # (f32 accumulation), which is plenty for policy-gradient use.
    assert jnp.allclose(mean, ref_mean, atol=2e-2, rtol=2e-2)
    assert jnp.allclose(std, ref_std, atol=1e-6, rtol=1e-6)

    print("KERNEL_OK")
</pallas_src>

<mosaic_0001>
module attributes {stable_mosaic.version = 11 : i64} {
  func.func @_policy_mean_kernel(%arg0: i32, %arg1: memref<8x2xf32, #tpu.memory_space<vmem>>, %arg2: memref<2x256xf32, #tpu.memory_space<vmem>>, %arg3: memref<1x256xf32, #tpu.memory_space<vmem>>, %arg4: memref<256x256xbf16, #tpu.memory_space<vmem>>, %arg5: memref<1x256xf32, #tpu.memory_space<vmem>>, %arg6: memref<256x2xbf16, #tpu.memory_space<vmem>>, %arg7: memref<1x2xf32, #tpu.memory_space<vmem>>, %arg8: memref<8x2xf32, #tpu.memory_space<vmem>>) attributes {dimension_semantics = [#tpu.dimension_semantics<parallel>], iteration_bounds = array<i64: 1>, scalar_prefetch = 0 : i64, scratch_operands = 0 : i64, tpu.core_type = #tpu.core_type<tc>, window_params = [{transform_indices = @transform_0, window_bounds = array<i64: 8, 2>}, {pipeline_mode = #tpu.pipeline_mode<synchronous>, transform_indices = @transform_1, window_bounds = array<i64: 2, 256>}, {pipeline_mode = #tpu.pipeline_mode<synchronous>, transform_indices = @transform_2, window_bounds = array<i64: 1, 256>}, {pipeline_mode = #tpu.pipeline_mode<synchronous>, transform_indices = @transform_3, window_bounds = array<i64: 256, 256>}, {pipeline_mode = #tpu.pipeline_mode<synchronous>, transform_indices = @transform_4, window_bounds = array<i64: 1, 256>}, {pipeline_mode = #tpu.pipeline_mode<synchronous>, transform_indices = @transform_5, window_bounds = array<i64: 256, 2>}, {pipeline_mode = #tpu.pipeline_mode<synchronous>, transform_indices = @transform_6, window_bounds = array<i64: 1, 2>}, {transform_indices = @transform_7, window_bounds = array<i64: 8, 2>}]} {
    %c0 = arith.constant 0 : index
    %c0_0 = arith.constant 0 : index
    %0 = vector.load %arg1[%c0, %c0_0] : memref<8x2xf32, #tpu.memory_space<vmem>>, vector<8x2xf32>
    %c0_1 = arith.constant 0 : index
    %c0_2 = arith.constant 0 : index
    %1 = vector.load %arg2[%c0_1, %c0_2] : memref<2x256xf32, #tpu.memory_space<vmem>>, vector<2x256xf32>
    %c0_3 = arith.constant 0 : index
    %c0_4 = arith.constant 0 : index
    %2 = vector.load %arg3[%c0_3, %c0_4] : memref<1x256xf32, #tpu.memory_space<vmem>>, vector<1x256xf32>
    %3 = vector.extract_strided_slice %0 {offsets = [0, 0], sizes = [8, 1], strides = [1, 1]} : vector<8x2xf32> to vector<8x1xf32>
    %4 = vector.extract_strided_slice %1 {offsets = [0, 0], sizes = [1, 256], strides = [1, 1]} : vector<2x256xf32> to vector<1x256xf32>
    %5 = vector.broadcast %3 : vector<8x1xf32> to vector<8x256xf32>
    %6 = vector.broadcast %4 : vector<1x256xf32> to vector<8x256xf32>
    %7 = arith.mulf %5, %6 : vector<8x256xf32>
    %8 = vector.broadcast %2 : vector<1x256xf32> to vector<8x256xf32>
    %9 = arith.addf %8, %7 : vector<8x256xf32>
    %10 = vector.extract_strided_slice %0 {offsets = [0, 1], sizes = [8, 1], strides = [1, 1]} : vector<8x2xf32> to vector<8x1xf32>
    %11 = vector.extract_strided_slice %1 {offsets = [1, 0], sizes = [1, 256], strides = [1, 1]} : vector<2x256xf32> to vector<1x256xf32>
    %12 = vector.broadcast %10 : vector<8x1xf32> to vector<8x256xf32>
    %13 = vector.broadcast %11 : vector<1x256xf32> to vector<8x256xf32>
    %14 = arith.mulf %12, %13 : vector<8x256xf32>
    %15 = arith.addf %9, %14 : vector<8x256xf32>
    %cst = arith.constant 0.000000e+00 : f32
    %16 = vector.broadcast %cst : f32 to vector<8x256xf32>
    %17 = arith.maximumf %15, %16 : vector<8x256xf32>
    %18 = arith.truncf %17 : vector<8x256xf32> to vector<8x256xbf16>
    %c0_5 = arith.constant 0 : index
    %c0_6 = arith.constant 0 : index
    %19 = vector.load %arg4[%c0_5, %c0_6] : memref<256x256xbf16, #tpu.memory_space<vmem>>, vector<256x256xbf16>
    %cst_7 = arith.constant dense<0.000000e+00> : vector<8x256xf32>
    %20 = tpu.matmul %18, %19, %cst_7 {dimension_numbers = #tpu.dot_dimension_numbers<[1], [0], [0], [1], [0, 0, 1, 1], [], []>} : vector<8x256xbf16>, vector<256x256xbf16>, vector<8x256xf32> -> vector<8x256xf32>
    %c0_8 = arith.constant 0 : index
    %c0_9 = arith.constant 0 : index
    %21 = vector.load %arg5[%c0_8, %c0_9] : memref<1x256xf32, #tpu.memory_space<vmem>>, vector<1x256xf32>
    %22 = vector.broadcast %21 : vector<1x256xf32> to vector<8x256xf32>
    %23 = arith.addf %20, %22 : vector<8x256xf32>
    %cst_10 = arith.constant 0.000000e+00 : f32
    %24 = vector.broadcast %cst_10 : f32 to vector<8x256xf32>
    %25 = arith.maximumf %23, %24 : vector<8x256xf32>
    %26 = arith.truncf %25 : vector<8x256xf32> to vector<8x256xbf16>
    %c0_11 = arith.constant 0 : index
    %c0_12 = arith.constant 0 : index
    %27 = vector.load %arg6[%c0_11, %c0_12] : memref<256x2xbf16, #tpu.memory_space<vmem>>, vector<256x2xbf16>
    %cst_13 = arith.constant dense<0.000000e+00> : vector<8x2xf32>
    %28 = tpu.matmul %26, %27, %cst_13 {dimension_numbers = #tpu.dot_dimension_numbers<[1], [0], [0], [1], [0, 0, 1, 1], [], []>} : vector<8x256xbf16>, vector<256x2xbf16>, vector<8x2xf32> -> vector<8x2xf32>
    %c0_14 = arith.constant 0 : index
    %c0_15 = arith.constant 0 : index
    %29 = vector.load %arg7[%c0_14, %c0_15] : memref<1x2xf32, #tpu.memory_space<vmem>>, vector<1x2xf32>
    %30 = vector.broadcast %29 : vector<1x2xf32> to vector<8x2xf32>
    %31 = arith.addf %28, %30 : vector<8x2xf32>
    %c0_16 = arith.constant 0 : index
    %c0_17 = arith.constant 0 : index
    %32 = vector.load %arg8[%c0_16, %c0_17] : memref<8x2xf32, #tpu.memory_space<vmem>>, vector<8x2xf32>
    tpu.vector_store %arg8[%c0_16, %c0_17], %31 {strides = array<i32>} : memref<8x2xf32, #tpu.memory_space<vmem>>, vector<8x2xf32>,
    return
  }
  func.func @transform_0(%arg0: i32) -> (i32, i32) {
    %c0_i32 = arith.constant 0 : i32
    %c0_i32_0 = arith.constant 0 : i32
    return %arg0, %c0_i32 : i32, i32
  }
  func.func @transform_1(%arg0: i32) -> (i32, i32) {
    %c0_i32 = arith.constant 0 : i32
    %c0_i32_0 = arith.constant 0 : i32
    %c0_i32_1 = arith.constant 0 : i32
    return %c0_i32, %c0_i32_0 : i32, i32
  }
  func.func @transform_2(%arg0: i32) -> (i32, i32) {
    %c0_i32 = arith.constant 0 : i32
    %c0_i32_0 = arith.constant 0 : i32
    %c0_i32_1 = arith.constant 0 : i32
    return %c0_i32, %c0_i32_0 : i32, i32
  }
  func.func @transform_3(%arg0: i32) -> (i32, i32) {
    %c0_i32 = arith.constant 0 : i32
    %c0_i32_0 = arith.constant 0 : i32
    %c0_i32_1 = arith.constant 0 : i32
    return %c0_i32, %c0_i32_0 : i32, i32
  }
  func.func @transform_4(%arg0: i32) -> (i32, i32) {
    %c0_i32 = arith.constant 0 : i32
    %c0_i32_0 = arith.constant 0 : i32
    %c0_i32_1 = arith.constant 0 : i32
    return %c0_i32, %c0_i32_0 : i32, i32
  }
  func.func @transform_5(%arg0: i32) -> (i32, i32) {
    %c0_i32 = arith.constant 0 : i32
    %c0_i32_0 = arith.constant 0 : i32
    %c0_i32_1 = arith.constant 0 : i32
    return %c0_i32, %c0_i32_0 : i32, i32
  }
  func.func @transform_6(%arg0: i32) -> (i32, i32) {
    %c0_i32 = arith.constant 0 : i32
    %c0_i32_0 = arith.constant 0 : i32
    %c0_i32_1 = arith.constant 0 : i32
    return %c0_i32, %c0_i32_0 : i32, i32
  }
  func.func @transform_7(%arg0: i32) -> (i32, i32) {
    %c0_i32 = arith.constant 0 : i32
    %c0_i32_0 = arith.constant 0 : i32
    return %arg0, %c0_i32 : i32, i32
  }
}

</mosaic_0001>

<bundles_post_ra>
// kernel: tpu_custom_call.1
= control target key start
LH: loop header
LB: loop body
LE: loop exit
PB: predicated region body
PF: predicated region fallthrough
CT: control target
= control target key end

     0   :  { %12 = vsyncpa [#allocation3], 0  ;;  %s777_s27 = smov [#allocation2]   ;;  %s778_s29 = smov 128   ;;  %s891_s0 = inlined_call_operand.vmem [shape: f32[8,2], index: 0, kind: input, shape index: {}]   ;;  %s892_s1 = inlined_call_operand.vmem [shape: f32[2,256], index: 1, kind: input, shape index: {}]   ;;  %s893_s2 = inlined_call_operand.vmem [shape: f32[1,256], index: 2, kind: input, shape index: {}]   ;;  %s894_s3 = inlined_call_operand.hbm [shape: bf16[256,256], index: 3, kind: input, shape index: {}]   ;;  %s895_s4 = inlined_call_operand.vmem [shape: f32[1,256], index: 4, kind: input, shape index: {}]   ;;  %s896_s5 = inlined_call_operand.vmem [shape: bf16[256,2], index: 5, kind: input, shape index: {}]   ;;  %s897_s6 = inlined_call_operand.vmem [shape: f32[1,2], index: 6, kind: input, shape index: {}]   ;;  %s898_s7 = inlined_call_operand.vmem [shape: f32[8,2], index: 7, kind: output, shape index: {}]  }
   0x1   :  { %s23_s26 = sshll.u32 %s894_s3, 4  ;;  %s25_s28 = sshll.u32 %s777_s27, 4  ;;  %s24_s26 = int_to_ptr.hbm [resolvable:$true] %s23_s26  ;;  %s26_s28 = int_to_ptr.vmem [resolvable:$true] %s25_s28 }
   0x2   :  { %s779_s30 = smov 8  }
   0x3   :  { %31 = dma.hbm_to_vmem [thread:$0]  %s24_s26, 4096, %s26_s28, [#allocation3], %s778_s29, %s778_s29, %s779_s30  }
   0x4   :  { %775 = dma.done.wait [#allocation3], 4096  }
   0x5   :  { %776 = vsyncadd [#allocation3], 4294963200  ;;  %v780_v0 = vmov 0   ;;  %v42_v1 = vld [vmem:[%s891_s0] sm:$0xff]  ;;  %v561_v2 = vld [vmem:[#allocation2 + $0x70] sm:$0xf] }
   0x6   :  { %748 = vset.pattern.permute.xlu0 %v780_v0  ;;  %v710_v3 = vld [vmem:[#allocation2 + $0x74] sm:$0xf0]  ;;  %v625_v5 = vld [vmem:[#allocation2 + $0xf0] sm:$0xf]  ;;  %v709_v7 = vld [vmem:[#allocation2 + $0x74] sm:$0xf] }
   0x7   :  { %47 = vperm.xlu0 %748, %v42_v1   ;;  %v562_v4 = vor.u32 %v710_v3, %v561_v2  ;;  %v726_v6 = vld [vmem:[#allocation2 + $0xf4] sm:$0xf0]  ;;  %v563_v9 = vld [vmem:[#allocation2 + $0x78] sm:$0xf0]  ;;  %v725_v10 = vld [vmem:[#allocation2 + $0xf4] sm:$0xf] }
   0x8   :  { %v626_v8 = vor.u32 %v726_v6, %v625_v5  ;;  %v627_v11 = vld [vmem:[#allocation2 + $0xf8] sm:$0xf0]  ;;  %v566_v12 = vor.u32 %v709_v7, %v563_v9  ;;  %v553_v14 = vld [vmem:[#allocation2 + $0x60] sm:$0xf]  ;;  %v708_v15 = vld [vmem:[#allocation2 + $0x64] sm:$0xf0] }
   0x9   :  { %282 = vmatpush.bf16.msra.mxu0 %v562_v4  ;;  %v630_v13 = vor.u32 %v725_v10, %v627_v11  ;;  %v617_v16 = vld [vmem:[#allocation2 + $0xe0] sm:$0xf]  ;;  %v554_v17 = vor.u32 %v708_v15, %v553_v14  ;;  %v724_v18 = vld [vmem:[#allocation2 + $0xe4] sm:$0xf0]  ;;  %v707_v19 = vld [vmem:[#allocation2 + $0x64] sm:$0xf] }
   0xa   :  { %295 = vmatpush.bf16.msra.mxu1 %v626_v8  ;;  %v555_v20 = vld [vmem:[#allocation2 + $0x68] sm:$0xf0]  ;;  %308 = vmatpush.bf16.msra.mxu2 %v566_v12  ;;  %v618_v21 = vor.u32 %v724_v18, %v617_v16  ;;  %v723_v23 = vld [vmem:[#allocation2 + $0xe4] sm:$0xf]  ;;  %v545_v25 = vld [vmem:[#allocation2 + $0x50] sm:$0xf] }
   0xb   :  { %321 = vmatpush.bf16.msra.mxu3 %v630_v13  ;;  %v558_v22 = vor.u32 %v707_v19, %v555_v20  ;;  %v619_v24 = vld [vmem:[#allocation2 + $0xe8] sm:$0xf0]  ;;  %v706_v27 = vld [vmem:[#allocation2 + $0x54] sm:$0xf0]  ;;  %v609_v28 = vld [vmem:[#allocation2 + $0xd0] sm:$0xf] }
   0xc   :  { %v622_v26 = vor.u32 %v723_v23, %v619_v24  ;;  %v722_v29 = vld [vmem:[#allocation2 + $0xd4] sm:$0xf0]  ;;  %v546_v30 = vor.u32 %v706_v27, %v545_v25  ;;  %v705_v31 = vld [vmem:[#allocation2 + $0x54] sm:$0xf]  ;;  %v547_v32 = vld [vmem:[#allocation2 + $0x58] sm:$0xf0] }
   0xd   :  { %283 = vmatpush.bf16.msra.mxu0 %v554_v17  ;;  %v721_v33 = vld [vmem:[#allocation2 + $0xd4] sm:$0xf]  ;;  %v610_v34 = vor.u32 %v722_v29, %v609_v28  ;;  %v611_v35 = vld [vmem:[#allocation2 + $0xd8] sm:$0xf0]  ;;  %v537_v36 = vld [vmem:[#allocation2 + $0x40] sm:$0xf]  ;;  %v550_v39 = vor.u32 %v705_v31, %v547_v32 }
   0xe   :  { %296 = vmatpush.bf16.msra.mxu1 %v618_v21  ;;  %v704_v37 = vld [vmem:[#allocation2 + $0x44] sm:$0xf0]  ;;  %v781_v38 = vmov 1   ;;  %309 = vmatpush.bf16.msra.mxu2 %v558_v22  ;;  %v601_v40 = vld [vmem:[#allocation2 + $0xc0] sm:$0xf]  ;;  %v614_v42 = vor.u32 %v721_v33, %v611_v35  ;;  %v734_v35 = vld [vmem:[%s896_s5 + $0x38] sm:$0xff] }
   0xf   :  { %749 = vset.pattern.permute.xlu0 %v781_v38  ;;  %v720_v41 = vld [vmem:[#allocation2 + $0xc4] sm:$0xf0]  ;;  %322 = vmatpush.bf16.msra.mxu3 %v622_v26  ;;  %v703_v43 = vld [vmem:[#allocation2 + $0x44] sm:$0xf]  ;;  %v539_v44 = vld [vmem:[#allocation2 + $0x48] sm:$0xf0]  ;;  %v538_v45 = vor.u32 %v704_v37, %v537_v36 }
  0x10   :  { %67 = vperm.xlu0 %749, %v42_v1   ;;  %v719_v46 = vld [vmem:[#allocation2 + $0xc4] sm:$0xf]  ;;  %v603_v47 = vld [vmem:[#allocation2 + $0xc8] sm:$0xf0]  ;;  %v602_v48 = vor.u32 %v720_v41, %v601_v40  ;;  %v542_v49 = vor.u32 %v703_v43, %v539_v44  ;;  %v529_v51 = vld [vmem:[#allocation2 + $0x30] sm:$0xf] }
  0x11   :  { %284 = vmatpush.bf16.msra.mxu0 %v546_v30  ;;  %v606_v50 = vor.u32 %v719_v46, %v603_v47  ;;  %v702_v52 = vld [vmem:[#allocation2 + $0x34] sm:$0xf0]  ;;  %v593_v53 = vld [vmem:[#allocation2 + $0xb0] sm:$0xf]  ;;  %v701_v56 = vld [vmem:[#allocation2 + $0x34] sm:$0xf] }
  0x12   :  { %297 = vmatpush.bf16.msra.mxu1 %v610_v34  ;;  %310 = vmatpush.bf16.msra.mxu2 %v550_v39  ;;  %v530_v54 = vor.u32 %v702_v52, %v529_v51  ;;  %v718_v55 = vld [vmem:[#allocation2 + $0xb4] sm:$0xf0]  ;;  %v531_v57 = vld [vmem:[#allocation2 + $0x38] sm:$0xf0]  ;;  %v717_v60 = vld [vmem:[#allocation2 + $0xb4] sm:$0xf] }
  0x13   :  { %323 = vmatpush.bf16.msra.mxu3 %v614_v42  ;;  %v594_v58 = vor.u32 %v718_v55, %v593_v53  ;;  %v534_v59 = vor.u32 %v701_v56, %v531_v57  ;;  %v595_v61 = vld [vmem:[#allocation2 + $0xb8] sm:$0xf0]  ;;  %v521_v63 = vld [vmem:[#allocation2 + $0x20] sm:$0xf]  ;;  %v700_v0 = vld [vmem:[#allocation2 + $0x24] sm:$0xf0] }
  0x14   :  { %v598_v62 = vor.u32 %v717_v60, %v595_v61  ;;  %v585_v1 = vld [vmem:[#allocation2 + $0xa0] sm:$0xf]  ;;  %v522_v2 = vor.u32 %v700_v0, %v521_v63  ;;  %v716_v3 = vld [vmem:[#allocation2 + $0xa4] sm:$0xf0]  ;;  %v699_v4 = vld [vmem:[#allocation2 + $0x24] sm:$0xf] }
  0x15   :  { %285 = vmatpush.bf16.msra.mxu0 %v538_v45  ;;  %v523_v5 = vld [vmem:[#allocation2 + $0x28] sm:$0xf0]  ;;  %v586_v6 = vor.u32 %v716_v3, %v585_v1  ;;  %v715_v8 = vld [vmem:[#allocation2 + $0xa4] sm:$0xf]  ;;  %v513_v11 = vld [vmem:[#allocation2 + $0x10] sm:$0xf] }
  0x16   :  { %298 = vmatpush.bf16.msra.mxu1 %v602_v48  ;;  %311 = vmatpush.bf16.msra.mxu2 %v542_v49  ;;  %v526_v7 = vor.u32 %v699_v4, %v523_v5  ;;  %v587_v9 = vld [vmem:[#allocation2 + $0xa8] sm:$0xf0]  ;;  %v698_v12 = vld [vmem:[#allocation2 + $0x14] sm:$0xf0]  ;;  %v577_v13 = vld [vmem:[#allocation2 + $0x90] sm:$0xf] }
  0x17   :  { %324 = vmatpush.bf16.msra.mxu3 %v606_v50  ;;  %v590_v10 = vor.u32 %v715_v8, %v587_v9  ;;  %v514_v14 = vor.u32 %v698_v12, %v513_v11  ;;  %v714_v15 = vld [vmem:[#allocation2 + $0x94] sm:$0xf0]  ;;  %v697_v16 = vld [vmem:[#allocation2 + $0x14] sm:$0xf]  ;;  %v515_v17 = vld [vmem:[#allocation2 + $0x18] sm:$0xf0] }
  0x18   :  { %v578_v18 = vor.u32 %v714_v15, %v577_v13  ;;  %v518_v19 = vor.u32 %v697_v16, %v515_v17  ;;  %v713_v20 = vld [vmem:[#allocation2 + $0x94] sm:$0xf]  ;;  %v579_v21 = vld [vmem:[#allocation2 + $0x98] sm:$0xf0]  ;;  %v505_v22 = vld [vmem:[#allocation2] sm:$0xf] }
  0x19   :  { %286 = vmatpush.bf16.msra.mxu0 %v530_v54  ;;  %v582_v23 = vor.u32 %v713_v20, %v579_v21  ;;  %v696_v24 = vld [vmem:[#allocation2 + $0x4] sm:$0xf0]  ;;  %v569_v25 = vld [vmem:[#allocation2 + $0x80] sm:$0xf]  ;;  %v695_v29 = vld [vmem:[#allocation2 + $0x4] sm:$0xf] }
  0x1a   :  { %299 = vmatpush.bf16.msra.mxu1 %v594_v58  ;;  %312 = vmatpush.bf16.msra.mxu2 %v534_v59  ;;  %v712_v26 = vld [vmem:[#allocation2 + $0x84] sm:$0xf0]  ;;  %v506_v27 = vor.u32 %v696_v24, %v505_v22  ;;  %v507_v30 = vld [vmem:[#allocation2 + $0x8] sm:$0xf0]  ;;  %v711_v31 = vld [vmem:[#allocation2 + $0x84] sm:$0xf] }
  0x1b   :  { %325 = vmatpush.bf16.msra.mxu3 %v598_v62  ;;  %v570_v28 = vor.u32 %v712_v26, %v569_v25  ;;  %v510_v32 = vor.u32 %v695_v29, %v507_v30  ;;  %v571_v33 = vld [vmem:[#allocation2 + $0x88] sm:$0xf0]  ;;  %v742_v36 = vld [vmem:[%s896_s5 + $0x78] sm:$0xff]  ;;  %v733_v37 = vld [vmem:[%s896_s5 + $0x30] sm:$0xff]  ;;  %vm496_vm0 = vcmask 15360  }
  0x1c   :  { %v574_v34 = vor.u32 %v711_v31, %v571_v33  ;;  %v741_v38 = vld [vmem:[%s896_s5 + $0x70] sm:$0xff]  ;;  %v732_v39 = vld [vmem:[%s896_s5 + $0x28] sm:$0xff]  ;;  %v43_v41 = vld [vmem:[%s892_s1] sm:$0xf] }
  0x1d   :  { %287 = vmatpush.bf16.msra.mxu0 %v522_v2  ;;  %v740_v40 = vld [vmem:[%s896_s5 + $0x68] sm:$0xff]  ;;  %v731_v42 = vld [vmem:[%s896_s5 + $0x20] sm:$0xff]  ;;  %v51_v44 = vperm.slane %v43_v41, 0  ;;  %v52_v45 = vperm.slane %v43_v41, 2  ;;  %v730_v47 = vld [vmem:[%s896_s5 + $0x18] sm:$0xff]  ;;  %v70_v51 = vperm.slane %v43_v41, 1 }
  0x1e   :  { %300 = vmatpush.bf16.msra.mxu1 %v586_v6  ;;  %313 = vmatpush.bf16.msra.mxu2 %v526_v7  ;;  %v739_v43 = vld [vmem:[%s896_s5 + $0x60] sm:$0xff]  ;;  %v71_v52 = vperm.slane %v43_v41, 3  ;;  %v729_v55 = vld [vmem:[%s896_s5 + $0x10] sm:$0xff]  ;;  %v738_v7 = vld [vmem:[%s896_s5 + $0x58] sm:$0xff] }
  0x1f   :  { %326 = vmatpush.bf16.msra.mxu3 %v590_v10  ;;  %v44_v48 = vld [vmem:[%s893_s2] sm:$0x3]  ;;  %v55_v49 = vperm.slane %v51_v44, 0  ;;  %v56_v50 = vperm.slane %v52_v45, 0  ;;  %v74_v58 = vperm.slane %v70_v51, 1  ;;  %v728_v8 = vld [vmem:[%s896_s5 + $0x8] sm:$0xff] }
  0x20   :  { %v60_v53 = vperm.slane %v44_v48, 0  ;;  %v61_v54 = vperm.slane %v44_v48, 1  ;;  %v75_v59 = vperm.slane %v71_v52, 1  ;;  %v737_v9 = vld [vmem:[%s896_s5 + $0x50] sm:$0xff]  ;;  %v727_v10 = vld [vmem:[%s896_s5] sm:$0xff]  ;;  %v736_v11 = vld [vmem:[%s896_s5 + $0x48] sm:$0xff] }
  0x21   :  { %288 = vmatpush.bf16.msra.mxu0 %v514_v14  ;;  %v735_v12 = vld [vmem:[%s896_s5 + $0x40] sm:$0xff] }
  0x22   :  { %301 = vmatpush.bf16.msra.mxu1 %v578_v18  ;;  %314 = vmatpush.bf16.msra.mxu2 %v518_v19  ;;  %v116_v13 = vld [vmem:[%s895_s4] sm:$0x3] }
  0x23   :  { %327 = vmatpush.bf16.msra.mxu3 %v582_v23  ;;  %v118_v14 = vperm.slane %v116_v13, 0  ;;  %v119_v19 = vperm.slane %v116_v13, 1  ;;  %v750_v33 = vld [vmem:[%s897_s6] ss:$0 sm:$0xff] }
  0x25   :  { %289 = vmatpush.bf16.msra.mxu0 %v506_v27 }
  0x26   :  { %302 = vmatpush.bf16.msra.mxu1 %v570_v28  ;;  %315 = vmatpush.bf16.msra.mxu2 %v510_v32 }
  0x27   :  { %328 = vmatpush.bf16.msra.mxu3 %v574_v34 }
  0x29   :  { %470 = vmatpush.bf16.msrb.mxu0 %v734_v35 }
  0x2a   :  { %483 = vmatpush.bf16.msrb.mxu1 %v742_v36 }
  0x2d   :  { %471 = vmatpush.bf16.msrb.mxu0 %v733_v37 }
  0x2e   :  { %484 = vmatpush.bf16.msrb.mxu1 %v741_v38 }
  0x31   :  { %472 = vmatpush.bf16.msrb.mxu0 %v732_v39 }
  0x32   :  { %485 = vmatpush.bf16.msrb.mxu1 %v740_v40 }
  0x35   :  { %473 = vmatpush.bf16.msrb.mxu0 %v731_v42 }
  0x36   :  { %486 = vmatpush.bf16.msrb.mxu1 %v739_v43 }
  0x39   :  { %474 = vmatpush.bf16.msrb.mxu0 %v730_v47 }
  0x3a   :  { %487 = vmatpush.bf16.msrb.mxu1 %v738_v7 }
  0x3d   :  { %475 = vmatpush.bf16.msrb.mxu0 %v729_v55 }
  0x3e   :  { %488 = vmatpush.bf16.msrb.mxu1 %v737_v9 }
  0x41   :  { %476 = vmatpush.bf16.msrb.mxu0 %v728_v8 }
  0x42   :  { %489 = vmatpush.bf16.msrb.mxu1 %v736_v11 }
  0x45   :  { %477 = vmatpush.bf16.msrb.mxu0 %v727_v10 }
  0x46   :  { %490 = vmatpush.bf16.msrb.mxu1 %v735_v12 }
  0x79   :  { %v48_v46 = vpop.permute.xlu0 %47 }
  0x7a   :  { %v57_v56 = vmul.f32 %v55_v49, %v48_v46  ;;  %v58_v57 = vmul.f32 %v56_v50, %v48_v46 }
  0x7c   :  { %v64_v61 = vadd.f32 %v60_v53, %v57_v56  ;;  %v65_v62 = vadd.f32 %v61_v54, %v58_v57 }
  0x82   :  { %v68_v60 = vpop.permute.xlu0 %67 }
  0x83   :  { %v76_v63 = vmul.f32 %v74_v58, %v68_v60  ;;  %v77_v0 = vmul.f32 %v75_v59, %v68_v60 }
  0x85   :  { %v78_v1 = vadd.f32 %v76_v63, %v64_v61  ;;  %v79_v2 = vadd.f32 %v77_v0, %v65_v62 }
  0x87   :  { %v80_v3 = vmax.f32 %v78_v1, 0.0  ;;  %v81_v4 = vmax.f32 %v79_v2, 0.0 }
  0x89   :  { %v82_v5 = vpack.c.bf16 %v80_v3, %v80_v3  ;;  %v83_v6 = vpack.c.bf16 %v81_v4, %v81_v4 }
  0x8b   :  { %290 = vmatmul.bf16.vlgmr.msra.gmra.mxu0 %v82_v5  ;;  %303 = vmatmul.bf16.vlgmr.msra.gmra.mxu1 %v83_v6 }
  0x8c   :  { %316 = vmatmul.bf16.vlgmr.msra.gmra.mxu2 %v82_v5  ;;  %329 = vmatmul.bf16.vlgmr.msra.gmra.mxu3 %v83_v6 }
 0x108   :  { %v291_v15 = vpop.f32.mrf.mxu0  ;;  %v304_v16 = vpop.f32.mrf.mxu1 }
 0x109   :  { %v292_v17 = vadd.f32 %v291_v15, %v118_v14 }
 0x10b   :  { %v305_v18 = vadd.f32 %v304_v16, %v292_v17 }
 0x10d   :  { %v334_v20 = vmax.f32 %v305_v18, 0.0 }
 0x10f   :  { %v336_v21 = vpack.c.bf16 %v334_v20, %v334_v20  ;;  %v317_v22 = vpop.f32.mrf.mxu2  ;;  %v330_v23 = vpop.f32.mrf.mxu3 }
 0x110   :  { %v318_v24 = vadd.f32 %v317_v22, %v119_v19  ;;  %v293_v25 = vpop.f32.mrf.mxu0  ;;  %v306_v26 = vpop.f32.mrf.mxu1 }
 0x111   :  { %478 = vmatmul.bf16.vlgmr.msrb.gmra.mxu0 %v336_v21 }
 0x112   :  { %v331_v27 = vadd.f32 %v330_v23, %v318_v24 }
 0x114   :  { %v335_v28 = vmax.f32 %v331_v27, 0.0 }
 0x116   :  { %v337_v29 = vpack.c.bf16 %v335_v28, %v335_v28 }
 0x117   :  { %v319_v30 = vpop.f32.mrf.mxu2  ;;  %v332_v31 = vpop.f32.mrf.mxu3 }
 0x118   :  { %491 = vmatmul.bf16.vlgmr.msrb.gmra.mxu1 %v337_v29 }
 0x18e   :  { %v479_v32 = vpop.f32.mrf.mxu0 }
 0x18f   :  { %v480_v34 = vadd.f32 %v750_v33, %v479_v32 }
 0x195   :  { %v492_v35 = vpop.f32.mrf.mxu1 }
 0x196   :  { %v493_v36 = vadd.f32 %v492_v35, %v480_v34  ;;  %v481_v37 = vpop.f32.mrf.mxu0 }
 0x198   :  { %497 = vst.msk [vmem:[%s898_s7] sm:$0xff] %vm496_vm0, %v493_v36 }
 0x19d   :  { %v494_v38 = vpop.f32.mrf.mxu1 }
 0x19e   :  { %502 = vsyncpa [#allocation3], 1 }

</bundles_post_ra>
